<compile_context>
chip_gen: v5e
topology: v5e:2x2
jax: 0.10.0
libtpu: 0.0.40
codegen_flags: <defaults>
</compile_context>

<pallas_src>
import functools

import numpy as np
import jax
import jax.numpy as jnp
from jax.experimental import pallas as pl
from jax.experimental.pallas import tpu as pltpu


# -----------------------------------------------------------------------------
# Pallas kernel: per-batch 1x1 conv (small MXU dot) + high-pass (tiled dense
# matmul against the circular-convolution operator), accumulated over K tiles.
# -----------------------------------------------------------------------------
def outconv_kernel(w_ref, x_ref, tt_ref, o_ref, acc_ref):
    # w_ref  : (C_out_pad, C_in)      bf16   zero-padded 1x1-conv weight
    # x_ref  : (N, C_in, TK)          bf16   K-slab of the flattened input
    # tt_ref : (TK, TN)               bf16   tile of the transposed high-pass op
    # o_ref  : (N*C_out_pad, TN)      f32    output column tile
    # acc_ref: (N*C_out_pad, TN)      f32    VMEM accumulator (persists over K)
    k = pl.program_id(1)
    nk = pl.num_programs(1)

    @pl.when(k == 0)
    def _init():
        acc_ref[...] = jnp.zeros_like(acc_ref)

    n_batch = x_ref.shape[0]
    c_out_pad = w_ref.shape[0]
    w = w_ref[...]
    tt = tt_ref[...]

    # Static unroll over the (small) batch: 2D dots only — no in-kernel reshapes.
    for n in range(n_batch):
        # 1x1 conv on this K-slab: (C_out_pad, C_in) @ (C_in, TK) -> f32
        y = jnp.dot(w, x_ref[n], preferred_element_type=jnp.float32)
        # Spectral high-pass partial product: (C_out_pad, TK) @ (TK, TN) -> f32
        z = jnp.dot(y.astype(jnp.bfloat16), tt,
                    preferred_element_type=jnp.float32)
        acc_ref[n * c_out_pad:(n + 1) * c_out_pad, :] += z

    @pl.when(k == nk - 1)
    def _flush():
        o_ref[...] = acc_ref[...].astype(o_ref.dtype)


# -----------------------------------------------------------------------------
# Filter-operator construction (fixed constants; host-side numpy, no FFT call).
# -----------------------------------------------------------------------------
def _high_pass_mask(H, W, k_h, L=25.0):
    fx = np.fft.fftfreq(H, d=1.0 / (H * 2.0 * np.pi / L))
    fy = np.fft.fftfreq(W, d=1.0 / (W * 2.0 * np.pi / L))
    kx, ky = np.meshgrid(fx, fy, indexing="ij")
    k = np.sqrt(kx ** 2 + ky ** 2)
    mask = np.exp(-k_h / (k + 1e-08))
    mask[0, 0] = 0.0
    return mask.astype(np.float64)


def _circular_conv_operator(H, W, k_h):
    """Return Tt (HW, HW) s.t. (y_flat @ Tt) == flat(real(ifft2(fft2(y)*mask)))."""
    mask = _high_pass_mask(H, W, k_h)
    # m = real(ifft2(mask)) built from cos/sin matrices (no FFT primitive).
    ang_h = 2.0 * np.pi * np.outer(np.arange(H), np.arange(H)) / H
    ang_w = 2.0 * np.pi * np.outer(np.arange(W), np.arange(W)) / W
    CH, SH = np.cos(ang_h), np.sin(ang_h)
    CW, SW = np.cos(ang_w), np.sin(ang_w)
    m = (CH @ mask @ CW.T - SH @ mask @ SW.T) / (H * W)          # (H, W)
    # T[(p,q),(h,w)] = m[(p-h)%H, (q-w)%W]
    dh = (np.arange(H)[:, None] - np.arange(H)[None, :]) % H     # [p, h]
    dw = (np.arange(W)[:, None] - np.arange(W)[None, :]) % W     # [q, w]
    T = m[dh[:, None, :, None], dw[None, :, None, :]]            # (H, W, H, W)
    Tt = T.reshape(H * W, H * W).T
    # Columns of Tt sum to zero in exact arithmetic (mask[0,0]=0 kills the DC
    # component); enforce it to f64 precision before quantization.
    Tt = Tt - Tt.mean(axis=0, keepdims=True)
    return np.asarray(Tt, dtype=np.float32)


@functools.lru_cache(maxsize=8)
def _cached_operator(H, W, k_h):
    """bf16 operator, cached per (H, W, k_h), resident on the default device."""
    tt_f32 = jnp.asarray(_circular_conv_operator(H, W, k_h), jnp.float32)
    tt_bf = tt_f32.astype(jnp.bfloat16)
    # bf16 rounding re-introduces a tiny DC leak (column sums ~1e-3).  Nudge the
    # smallest-magnitude entry of each column so the *quantized* operator still
    # annihilates per-channel constants (this is why the conv bias is dropped).
    tt_w = tt_bf.astype(jnp.float32)
    resid = jnp.sum(tt_w, axis=0)                                # (HW,)
    idx = jnp.argmin(jnp.abs(tt_w), axis=0)                      # (HW,)
    col = jnp.arange(tt_w.shape[1])
    fixed = (tt_w[idx, col] - resid).astype(jnp.bfloat16)
    return tt_bf.at[idx, col].set(fixed)


# -----------------------------------------------------------------------------
# Jitted device-side wrapper (pad, cast, pallas_call, un-pad all fuse under jit).
# -----------------------------------------------------------------------------
def _round_up(a, b):
    return (a + b - 1) // b * b


def _pick_tile(hw, target=512):
    if hw <= target:
        return hw
    for t in (target, 256, 128):
        if hw % t == 0:
            return t
    return hw  # fallback: untiled along this axis


@functools.partial(jax.jit, static_argnames=("tn", "tk"))
def _outconv_apply(x, weight, tt, *, tn, tk):
    N, C_in, H, W = x.shape
    C_out = weight.shape[0]
    HW = H * W
    C_out_pad = _round_up(max(C_out, 1), 8)          # full f32 sublane groups
    M = N * C_out_pad

    w_pad = jnp.zeros((C_out_pad, C_in), jnp.bfloat16)
    w_pad = w_pad.at[:C_out, :].set(weight.astype(jnp.bfloat16))
    x_b = x.reshape(N, C_in, HW).astype(jnp.bfloat16)

    grid = (HW // tn, HW // tk)                      # (output cols, reduction)
    out_flat = pl.pallas_call(
        outconv_kernel,
        out_shape=jax.ShapeDtypeStruct((M, HW), jnp.float32),
        grid_spec=pltpu.PrefetchScalarGridSpec(
            num_scalar_prefetch=0,
            grid=grid,
            in_specs=[
                pl.BlockSpec((C_out_pad, C_in), lambda j, k: (0, 0)),   # weight
                pl.BlockSpec((N, C_in, tk), lambda j, k: (0, 0, k)),    # x K-slab
                pl.BlockSpec((tk, tn), lambda j, k: (k, j)),            # Tt tile
            ],
            out_specs=pl.BlockSpec((M, tn), lambda j, k: (0, j)),
            scratch_shapes=[pltpu.VMEM((M, tn), jnp.float32)],
        ),
        compiler_params=pltpu.CompilerParams(
            # Column tiles are independent -> "parallel" (v7x megacore);
            # the K reduction must stay in order -> "arbitrary", last.
            dimension_semantics=("parallel", "arbitrary"),
        ),
    )(w_pad, x_b, tt)

    out = out_flat.reshape(N, C_out_pad, H, W)[:, :C_out]
    return out.astype(x.dtype)


def outconv_forward(x, weight, bias=None, k_h=3.0, *, tn=None, tk=None):
    """x: (N, C_in, H, W) f32; weight: (C_out, C_in); bias accepted but unused
    (it is mathematically annihilated by the high-pass: mask[0,0] == 0)."""
    del bias  # dead work removed — the high-pass kills constant offsets.
    N, C_in, H, W = x.shape
    HW = H * W
    if tn is None:
        tn = _pick_tile(HW)
    if tk is None:
        tk = _pick_tile(HW)
    assert HW % tn == 0 and HW % tk == 0, "tile sizes must divide H*W"
    tt = _cached_operator(H, W, float(k_h))          # cached: built once
    return _outconv_apply(x, weight, tt, tn=tn, tk=tk)


# -----------------------------------------------------------------------------
# Pure-JAX reference (uses jnp.fft, only for verification; keeps the bias to
# demonstrate that it is annihilated by the high-pass).
# -----------------------------------------------------------------------------
def reference_forward(x, weight, bias, k_h=3.0):
    y = jnp.einsum("oc,nchw->nohw", weight, x) + bias[None, :, None, None]
    H, W = y.shape[-2:]
    mask = jnp.asarray(_high_pass_mask(H, W, float(k_h)), dtype=jnp.float32)
    yf = jnp.fft.fft2(y, axes=(-2, -1))
    return jnp.fft.ifft2(yf * mask, axes=(-2, -1)).real.astype(x.dtype)


if __name__ == "__main__":
    N, C_in, C_out, H, W = 2, 4, 3, 16, 16

    key = jax.random.PRNGKey(0)
    kx, kw, kb = jax.random.split(key, 3)
    x = jax.random.normal(kx, (N, C_in, H, W), dtype=jnp.float32)

    # Deterministic Conv2d(k=1) init, PyTorch-style uniform(+-1/sqrt(fan_in)).
    bound = 1.0 / np.sqrt(C_in * 1 * 1)
    weight = jax.random.uniform(kw, (C_out, C_in), jnp.float32, -bound, bound)
    bias = jax.random.uniform(kb, (C_out,), jnp.float32, -bound, bound)

    # tn=tk=128 at this demo size (HW=256) to exercise the multi-step
    # (parallel, arbitrary) grid with the VMEM accumulator; production default
    # is min(HW, 512)-wide tiles.
    out = jax.block_until_ready(
        outconv_forward(x, weight, bias, k_h=3.0, tn=128, tk=128))
    ref = jax.block_until_ready(reference_forward(x, weight, bias, k_h=3.0))

    # bf16 operands / f32 accumulation -> slightly looser tolerance than pure f32.
    np.testing.assert_allclose(np.asarray(out), np.asarray(ref),
                               rtol=2e-2, atol=2e-2)

    print("KERNEL_OK")
</pallas_src>

<mosaic_0001>
module attributes {stable_mosaic.version = 11 : i64} {
  func.func @outconv_kernel(%arg0: i32, %arg1: i32, %arg2: memref<8x4xbf16, #tpu.memory_space<vmem>>, %arg3: memref<2x4x128xbf16, #tpu.memory_space<vmem>>, %arg4: memref<128x128xbf16, #tpu.memory_space<vmem>>, %arg5: memref<16x128xf32, #tpu.memory_space<vmem>>, %arg6: memref<16x128xf32, #tpu.memory_space<vmem>>) attributes {dimension_semantics = [#tpu.dimension_semantics<parallel>, #tpu.dimension_semantics<arbitrary>], iteration_bounds = array<i64: 2, 2>, scalar_prefetch = 0 : i64, scratch_operands = 1 : i64, tpu.core_type = #tpu.core_type<tc>, window_params = [{pipeline_mode = #tpu.pipeline_mode<synchronous>, transform_indices = @transform_0, window_bounds = array<i64: 8, 4>}, {transform_indices = @transform_1, window_bounds = array<i64: 2, 4, 128>}, {transform_indices = @transform_2, window_bounds = array<i64: 128, 128>}, {transform_indices = @transform_3, window_bounds = array<i64: 16, 128>}]} {
    %c0_i32 = arith.constant 0 : i32
    %0 = arith.cmpi eq, %arg1, %c0_i32 : i32
    %1 = arith.extui %0 : i1 to i32
    %c0_i32_0 = arith.constant 0 : i32
    %2 = arith.cmpi ne, %1, %c0_i32_0 : i32
    scf.if %2 {
      %cst_20 = arith.constant 0.000000e+00 : f32
      %24 = vector.broadcast %cst_20 : f32 to vector<16x128xf32>
      %c0_21 = arith.constant 0 : index
      %c0_22 = arith.constant 0 : index
      %25 = vector.load %arg6[%c0_21, %c0_22] : memref<16x128xf32, #tpu.memory_space<vmem>>, vector<16x128xf32>
      tpu.vector_store %arg6[%c0_21, %c0_22], %24 {strides = array<i32>} : memref<16x128xf32, #tpu.memory_space<vmem>>, vector<16x128xf32>,
    } else {
    }
    %c0 = arith.constant 0 : index
    %c0_1 = arith.constant 0 : index
    %3 = vector.load %arg2[%c0, %c0_1] : memref<8x4xbf16, #tpu.memory_space<vmem>>, vector<8x4xbf16>
    %c0_2 = arith.constant 0 : index
    %c0_3 = arith.constant 0 : index
    %4 = vector.load %arg4[%c0_2, %c0_3] : memref<128x128xbf16, #tpu.memory_space<vmem>>, vector<128x128xbf16>
    %c0_4 = arith.constant 0 : index
    %c0_5 = arith.constant 0 : index
    %c0_6 = arith.constant 0 : index
    %5 = vector.load %arg3[%c0_4, %c0_5, %c0_6] : memref<2x4x128xbf16, #tpu.memory_space<vmem>>, vector<1x4x128xbf16>
    %6 = vector.shape_cast %5 : vector<1x4x128xbf16> to vector<4x128xbf16>
    %cst = arith.constant dense<0.000000e+00> : vector<8x128xf32>
    %7 = tpu.matmul %3, %6, %cst {dimension_numbers = #tpu.dot_dimension_numbers<[1], [0], [0], [1], [0, 0, 1, 1], [], []>} : vector<8x4xbf16>, vector<4x128xbf16>, vector<8x128xf32> -> vector<8x128xf32>
    %8 = arith.truncf %7 : vector<8x128xf32> to vector<8x128xbf16>
    %cst_7 = arith.constant dense<0.000000e+00> : vector<8x128xf32>
    %9 = tpu.matmul %8, %4, %cst_7 {dimension_numbers = #tpu.dot_dimension_numbers<[1], [0], [0], [1], [0, 0, 1, 1], [], []>} : vector<8x128xbf16>, vector<128x128xbf16>, vector<8x128xf32> -> vector<8x128xf32>
    %c0_8 = arith.constant 0 : index
    %c0_9 = arith.constant 0 : index
    %10 = vector.load %arg6[%c0_8, %c0_9] : memref<16x128xf32, #tpu.memory_space<vmem>>, vector<8x128xf32>
    %11 = arith.addf %10, %9 : vector<8x128xf32>
    %c0_10 = arith.constant 0 : index
    %c0_11 = arith.constant 0 : index
    %12 = vector.load %arg6[%c0_10, %c0_11] : memref<16x128xf32, #tpu.memory_space<vmem>>, vector<8x128xf32>
    tpu.vector_store %arg6[%c0_10, %c0_11], %11 {strides = array<i32>} : memref<16x128xf32, #tpu.memory_space<vmem>>, vector<8x128xf32>,
    %c1 = arith.constant 1 : index
    %c0_12 = arith.constant 0 : index
    %c0_13 = arith.constant 0 : index
    %13 = vector.load %arg3[%c1, %c0_12, %c0_13] : memref<2x4x128xbf16, #tpu.memory_space<vmem>>, vector<1x4x128xbf16>
    %14 = vector.shape_cast %13 : vector<1x4x128xbf16> to vector<4x128xbf16>
    %cst_14 = arith.constant dense<0.000000e+00> : vector<8x128xf32>
    %15 = tpu.matmul %3, %14, %cst_14 {dimension_numbers = #tpu.dot_dimension_numbers<[1], [0], [0], [1], [0, 0, 1, 1], [], []>} : vector<8x4xbf16>, vector<4x128xbf16>, vector<8x128xf32> -> vector<8x128xf32>
    %16 = arith.truncf %15 : vector<8x128xf32> to vector<8x128xbf16>
    %cst_15 = arith.constant dense<0.000000e+00> : vector<8x128xf32>
    %17 = tpu.matmul %16, %4, %cst_15 {dimension_numbers = #tpu.dot_dimension_numbers<[1], [0], [0], [1], [0, 0, 1, 1], [], []>} : vector<8x128xbf16>, vector<128x128xbf16>, vector<8x128xf32> -> vector<8x128xf32>
    %c8 = arith.constant 8 : index
    %c0_16 = arith.constant 0 : index
    %18 = vector.load %arg6[%c8, %c0_16] : memref<16x128xf32, #tpu.memory_space<vmem>>, vector<8x128xf32>
    %19 = arith.addf %18, %17 : vector<8x128xf32>
    %c8_17 = arith.constant 8 : index
    %c0_18 = arith.constant 0 : index
    %20 = vector.load %arg6[%c8_17, %c0_18] : memref<16x128xf32, #tpu.memory_space<vmem>>, vector<8x128xf32>
    tpu.vector_store %arg6[%c8_17, %c0_18], %19 {strides = array<i32>} : memref<16x128xf32, #tpu.memory_space<vmem>>, vector<8x128xf32>,
    %c1_i32 = arith.constant 1 : i32
    %21 = arith.cmpi eq, %arg1, %c1_i32 : i32
    %22 = arith.extui %21 : i1 to i32
    %c0_i32_19 = arith.constant 0 : i32
    %23 = arith.cmpi ne, %22, %c0_i32_19 : i32
    scf.if %23 {
      %c0_20 = arith.constant 0 : index
      %c0_21 = arith.constant 0 : index
      %24 = vector.load %arg6[%c0_20, %c0_21] : memref<16x128xf32, #tpu.memory_space<vmem>>, vector<16x128xf32>
      %c0_22 = arith.constant 0 : index
      %c0_23 = arith.constant 0 : index
      %25 = vector.load %arg5[%c0_22, %c0_23] : memref<16x128xf32, #tpu.memory_space<vmem>>, vector<16x128xf32>
      tpu.vector_store %arg5[%c0_22, %c0_23], %24 {strides = array<i32>} : memref<16x128xf32, #tpu.memory_space<vmem>>, vector<16x128xf32>,
    } else {
    }
    return
  }
  func.func @transform_0(%arg0: i32, %arg1: i32) -> (i32, i32) {
    %c0_i32 = arith.constant 0 : i32
    %c0_i32_0 = arith.constant 0 : i32
    %c0_i32_1 = arith.constant 0 : i32
    return %c0_i32, %c0_i32_0 : i32, i32
  }
  func.func @transform_1(%arg0: i32, %arg1: i32) -> (i32, i32, i32) {
    %c0_i32 = arith.constant 0 : i32
    %c0_i32_0 = arith.constant 0 : i32
    %c0_i32_1 = arith.constant 0 : i32
    return %c0_i32, %c0_i32_0, %arg1 : i32, i32, i32
  }
  func.func @transform_2(%arg0: i32, %arg1: i32) -> (i32, i32) {
    %c0_i32 = arith.constant 0 : i32
    return %arg1, %arg0 : i32, i32
  }
  func.func @transform_3(%arg0: i32, %arg1: i32) -> (i32, i32) {
    %c0_i32 = arith.constant 0 : i32
    %c0_i32_0 = arith.constant 0 : i32
    return %c0_i32, %arg0 : i32, i32
  }
}

</mosaic_0001>

<bundles_post_ra>
// kernel: _outconv_apply.1
= control target key start
LH: loop header
LB: loop body
LE: loop exit
PB: predicated region body
PF: predicated region fallthrough
CT: control target
= control target key end

     0   :  { %s895_s12 = smov 0   ;;  %s897_s13 = smov 0   ;;  %s1092_s0 = inlined_call_operand.vmem [shape: bf16[8,4], index: 0, kind: input, shape index: {}]   ;;  %s1093_s1 = inlined_call_operand.vmem [shape: bf16[2,4,256], index: 1, kind: input, shape index: {}]   ;;  %s1094_s2 = inlined_call_operand.vmem [shape: bf16[256,256], index: 2, kind: input, shape index: {}]   ;;  %s1095_s3 = inlined_call_operand.vmem [shape: f32[16,256], index: 3, kind: output, shape index: {}]  }
   0x1   :  { %s899_s14 = smov 0   ;;  %s901_s15 = smov 0  }
   0x2   :  { %s903_s16 = smov 0   ;;  %s905_s17 = smov 0  }
   0x3   :  { %s907_s18 = smov 0   ;;  %s909_s19 = smov 0  }
   0x4   :  { %s911_s20 = smov 0   ;;  %s913_s21 = smov 0  }
   0x5   :  { %s915_s22 = smov 0  }
   0x6 LB: > { %s633_s23 = sadd.s32 4294967295, %s872_s22   ;;  %s22_s24 = sadd.s32 1, %s864_s20  ;;  %s872_s22 = sphi %s915_s22, %s13_s22   ;;  %s868_s21 = sphi %s913_s21, %s1116_s21   ;;  %s864_s20 = sphi %s911_s20, %s1115_s20   ;;  %s860_s19 = sphi %s909_s19, %s1114_s19   ;;  %s856_s18 = sphi %s907_s18, %s1113_s18   ;;  %s852_s17 = sphi %s905_s17, %s1112_s17   ;;  %s848_s16 = sphi %s903_s16, %s1111_s16   ;;  %s844_s15 = sphi %s901_s15, %s1110_s15   ;;  %s840_s14 = sphi %s899_s14, %s1109_s14   ;;  %s836_s13 = sphi %s897_s13, %s1108_s13   ;;  %s832_s12 = sphi %s895_s12, %s1107_s12  }
   0x7   : > { %p23_p0 = scmp.ge.s32.totalorder %s22_s24, 2  ;;  %s25_s25 = sadd.s32 1, %s868_s21 }
   0x8   : > { %s53_s26 = sadd.s32 1, %s852_s17  ;;  %p60_p1 = scmp.ne.s32.totalorder %s852_s17, %s848_s16 }
   0x9   : > { %s1118_s24 = smov (%p23_p0, %s22_s24), 0  ;;  %s1120_s25 = smov (!%p23_p0, %s25_s25), %s868_s21 }
   0xa   : > { %1098 = sst [smem:[#allocation6_spill]] %s1118_s24  ;;  %s50_s27 = ssub.s32 %s864_s20, %s1118_s24 }
   0xb   : > { %p61_p2 = scmp.eq.s32.totalorder %s872_s22, 0  ;;  %p27_p3 = scmp.ge.s32.totalorder %s1120_s25, 2 }
   0xc   : > { %p51_p4 = scmp.eq.s32.totalorder %s50_s27, 0  ;;  %s81_s29 = sadd.s32 1, %s844_s15 }
   0xd   : > { %p962_p5 = por %p61_p2, %p60_p1  ;;  %s1122_s25 = smov (%p27_p3, %s1120_s25), 0 }
   0xe   : > { %1100 = sst [smem:[#allocation7_spill]] %s1122_s25  ;;  %s77_s4 = ssub.s32 %s868_s21, %s1122_s25 }
   0xf   : > { %s970_s30 = scalar_select %p51_p4, %s852_s17, %s53_s26  }
  0x10   : > { %p88_p6 = scmp.ne.s32.totalorder %s844_s15, %s840_s14  ;;  %s78_s5 = sor.u32 %s77_s4, %s50_s27 }
  0x11   : > { %1101 = sst [smem:[#allocation8_spill]] %s970_s30  ;;  %p105_p7 = scmp.eq.s32.totalorder %s77_s4, 0 }
  0x12   : > { %p79_p8 = scmp.eq.s32.totalorder %s78_s5, 0  ;;  %p976_p9 = por %p88_p6, %p61_p2 }
  0x13   : > { %s107_s7 = sadd.s32 1, %s836_s13  ;;  %p117_p10 = scmp.ne.s32.totalorder %s836_s13, %s832_s12 }
  0x14   : > { %s984_s8 = scalar_select %p79_p8, %s844_s15, %s81_s29  }
  0x15   : > { %s987_s9 = scalar_select %p105_p7, %s836_s13, %s107_s7  }
  0x16   : > { %p118_p11 = scmp.eq.s32.totalorder %s633_s23, 3  ;;  %p636_p13 = scmp.ge.s32.totalorder %s872_s22, 4 }
  0x18   : > { %p989_p12 = por %p118_p11, %p117_p10  ;;  %143 = sbr.rel (%p636_p13) target bundleno = 57 (0x39), region = 20 }
  0x1d   : > { %146 = sbr.rel (!%p962_p5) target bundleno = 35 (0x23), region = 24  ;;  %s148_s11 = sand.u32 (%p962_p5), 1, %s852_s17  }
  0x1e   : > { %s638_s26 = sshll.u32 (%p962_p5), %s864_s20, 1  ;;  %s637_s27 = sshll.u32 (%p962_p5), %s148_s11, 2 }
  0x1f   : > { %s152_s5 = scalar_lea.vmem (%p962_p5), %s1093_s1, %s638_s26  ;;  %s150_s23 = scalar_lea.vmem (%p962_p5), [#allocation3], %s637_s27 }
  0x20   : > { %v169_v0 = vld [vmem:[%s152_s5] sm:$0x3] (%p962_p5)  ;;  %v171_v1 = vld [vmem:[%s152_s5 + $0x4] sm:$0x3] (%p962_p5) }
  0x21   : > { %170 = vst [vmem:[%s150_s23] sm:$0x3] (%p962_p5), %v169_v0 }
  0x22   : > { %172 = vst [vmem:[%s150_s23 + $0x2] sm:$0x3] %v171_v1 }
  0x23 PF: > { %192 = sbr.rel (!%p976_p9) target bundleno = 57 (0x39), region = 58  ;;  %s194_s28 = sand.u32 (%p976_p9), 1, %s844_s15  }
  0x24   : > { %s688_s7 = sshll.u32 (%p976_p9), %s864_s20, 5  ;;  %s639_s25 = sshll.u32 (%p976_p9), %s194_s28, 6 }
  0x25   : > { %s199_s11 = sadd.s32 (%p976_p9), %s868_s21, %s688_s7  ;;  %s196_s6 = scalar_lea.vmem (%p976_p9), [#allocation4], %s639_s25 }
  0x26   : > { %s642_s24 = sshll.u32 (%p976_p9), %s199_s11, 2 }
  0x27   : > { %s1009_s26 = scalar_lea.vmem (%p976_p9), %s1094_s2, %s642_s24 }
  0x28   : > { %v218_v2 = vld [vmem:[%s1009_s26] sm:$0xf]  ;;  %v220_v3 = vld [vmem:[%s1009_s26 + $0x8] sm:$0xf]  ;;  %v222_v4 = vld [vmem:[%s1009_s26 + $0x10] sm:$0xf] }
  0x29   : > { %219 = vst [vmem:[%s196_s6] sm:$0xf] %v218_v2  ;;  %v224_v5 = vld [vmem:[%s1009_s26 + $0x18] sm:$0xf]  ;;  %v226_v6 = vld [vmem:[%s1009_s26 + $0x20] sm:$0xf] }
  0x2a   : > { %221 = vst [vmem:[%s196_s6 + $0x4] sm:$0xf] %v220_v3  ;;  %v228_v7 = vld [vmem:[%s1009_s26 + $0x28] sm:$0xf]  ;;  %v230_v8 = vld [vmem:[%s1009_s26 + $0x30] sm:$0xf] }
  0x2b   : > { %223 = vst [vmem:[%s196_s6 + $0x8] sm:$0xf] %v222_v4  ;;  %v232_v9 = vld [vmem:[%s1009_s26 + $0x38] sm:$0xf]  ;;  %v234_v10 = vld [vmem:[%s1009_s26 + $0x40] sm:$0xf] }
  0x2c   : > { %225 = vst [vmem:[%s196_s6 + $0xc] sm:$0xf] %v224_v5  ;;  %v236_v11 = vld [vmem:[%s1009_s26 + $0x48] sm:$0xf]  ;;  %v238_v12 = vld [vmem:[%s1009_s26 + $0x50] sm:$0xf] }
  0x2d   : > { %227 = vst [vmem:[%s196_s6 + $0x10] sm:$0xf] %v226_v6  ;;  %v240_v13 = vld [vmem:[%s1009_s26 + $0x58] sm:$0xf]  ;;  %v242_v14 = vld [vmem:[%s1009_s26 + $0x60] sm:$0xf] }
  0x2e   : > { %229 = vst [vmem:[%s196_s6 + $0x14] sm:$0xf] %v228_v7  ;;  %v244_v15 = vld [vmem:[%s1009_s26 + $0x68] sm:$0xf]  ;;  %v246_v16 = vld [vmem:[%s1009_s26 + $0x70] sm:$0xf] }
  0x2f   : > { %231 = vst [vmem:[%s196_s6 + $0x18] sm:$0xf] %v230_v8  ;;  %v248_v17 = vld [vmem:[%s1009_s26 + $0x78] sm:$0xf] }
  0x30   : > { %233 = vst [vmem:[%s196_s6 + $0x1c] sm:$0xf] %v232_v9 }
  0x31   : > { %235 = vst [vmem:[%s196_s6 + $0x20] sm:$0xf] %v234_v10 }
  0x32   : > { %237 = vst [vmem:[%s196_s6 + $0x24] sm:$0xf] %v236_v11 }
  0x33   : > { %239 = vst [vmem:[%s196_s6 + $0x28] sm:$0xf] %v238_v12 }
  0x34   : > { %241 = vst [vmem:[%s196_s6 + $0x2c] sm:$0xf] %v240_v13 }
  0x35   : > { %243 = vst [vmem:[%s196_s6 + $0x30] sm:$0xf] %v242_v14 }
  0x36   : > { %245 = vst [vmem:[%s196_s6 + $0x34] sm:$0xf] %v244_v15 }
  0x37   : > { %247 = vst [vmem:[%s196_s6 + $0x38] sm:$0xf] %v246_v16 }
  0x38   : > { %249 = vst [vmem:[%s196_s6 + $0x3c] sm:$0xf] %v248_v17 }
  0x39 PF: > { %p643_p0 = scmp.ge.s32.totalorder %s872_s22, 1  ;;  %p304_p1 = scmp.lt.s32.totalorder %s872_s22, 5 }
  0x3b   : > { %p305_p2 = pnand %p643_p0, %p304_p1 }
  0x3c   : > { %s311_s24 = sand.u32 (!%p305_p2), 1, %s848_s16   ;;  %s318_s25 = sand.u32 (!%p305_p2), 1, %s840_s14  }
  0x3d   : > { %308 = sbr.rel (%p305_p2) target bundleno = 365 (0x16d), region = 99  ;;  %s644_s30 = sshll.u32 (!%p305_p2), %s311_s24, 2 }
  0x3e   : > { %s645_s27 = sshll.u32 (!%p305_p2), %s318_s25, 6  ;;  %s341_s4 = sand.u32 (!%p305_p2), 1, %s832_s12  }
  0x3f   : > { %s646_s5 = sshll.u32 (!%p305_p2), %s341_s4, 4  ;;  %s313_s23 = scalar_lea.vmem (!%p305_p2), [#allocation3], %s644_s30 }
  0x40   : > { %s1032_s28 = scalar_lea.vmem (!%p305_p2), [#allocation4], %s645_s27  ;;  %s1034_s7 = scalar_lea.vmem (!%p305_p2), [#allocation5], %s646_s5 }
  0x41   : > { %p647_p3 = scmp.ne.s32.totalorder (!%p305_p2), %s856_s18, 0 }
  0x43   : > { %349 = sbr.rel (%p647_p3) target bundleno = 75 (0x4b), region = 111 }
  0x48   : > { %v874_v18 = vmov 0.0  }
  0x49   : > { %350 = vst [vmem:[#allocation2] sm:$0xff] %v874_v18 }
  0x4a   : > { %351 = vst [vmem:[#allocation2 + $0x8] sm:$0xff] %v874_v18 }
  0x4b PF: > { %vm374_vm0 = vcmask 1041408   ;;  %v681_v19 = vld [vmem:[%s313_s23 + $0x2] sm:$0x3]  ;;  %v369_v21 = vld [vmem:[%s313_s23] sm:$0x3]  ;;  %vm370_vm1 = vcmask 31744  }
  0x4c   : > { %v459_v20 = vsel %vm374_vm0, %v681_v19, 0  ;;  %v696_v22 = vld [vmem:[%s1032_s28 + $0x38] sm:$0xff]  ;;  %v352_v23 = vld [vmem:[%s1092_s0] sm:$0xf]  ;;  %v376_v24 = vsel %vm374_vm0, %v369_v21, 0  ;;  %v695_v25 = vld [vmem:[%s1032_s28 + $0x30] sm:$0xff] }
  0x4d   : > { %468 = vmatpush.bf16.msra.mxu2 %v459_v20  ;;  %385 = vmatpush.bf16.msra.mxu0 %v376_v24  ;;  %v694_v26 = vld [vmem:[%s1032_s28 + $0x28] sm:$0xff]  ;;  %v693_v27 = vld [vmem:[%s1032_s28 + $0x20] sm:$0xff]  ;;  %v692_v28 = vld [vmem:[%s1032_s28 + $0x18] sm:$0xff]  ;;  %p683_p4 = scmp.ne.s32.totalorder %s856_s18, 1 }
  0x4e   : > { %440 = vmatpush.bf16.msra.mxu1 %v696_v22  ;;  %475 = vmatpush.bf16.msra.mxu3 %v696_v22  ;;  %v691_v29 = vld [vmem:[%s1032_s28 + $0x10] sm:$0xff]  ;;  %v690_v30 = vld [vmem:[%s1032_s28 + $0x8] sm:$0xff]  ;;  %v689_v31 = vld [vmem:[%s1032_s28] sm:$0xff] }
  0x50   : > { %682 = vmatmul.msk.bf16.vlgmr.msra.gmra.mxu2 %vm370_vm1, %v352_v23  ;;  %648 = vmatmul.msk.bf16.vlgmr.msra.gmra.mxu0 %vm370_vm1, %v352_v23  ;;  %v453_v38 = vld [vmem:[#allocation2] sm:$0xff] }
  0x51   : > { %v488_v42 = vld [vmem:[#allocation2 + $0x8] sm:$0xff] }
  0x52   : > { %441 = vmatpush.bf16.msra.mxu1 %v695_v25  ;;  %476 = vmatpush.bf16.msra.mxu3 %v695_v25 }
  0x56   : > { %442 = vmatpush.bf16.msra.mxu1 %v694_v26  ;;  %477 = vmatpush.bf16.msra.mxu3 %v694_v26 }
  0x5a   : > { %443 = vmatpush.bf16.msra.mxu1 %v693_v27  ;;  %478 = vmatpush.bf16.msra.mxu3 %v693_v27 }
  0x5e   : > { %444 = vmatpush.bf16.msra.mxu1 %v692_v28  ;;  %479 = vmatpush.bf16.msra.mxu3 %v692_v28 }
  0x62   : > { %445 = vmatpush.bf16.msra.mxu1 %v691_v29  ;;  %480 = vmatpush.bf16.msra.mxu3 %v691_v29 }
  0x66   : > { %446 = vmatpush.bf16.msra.mxu1 %v690_v30  ;;  %481 = vmatpush.bf16.msra.mxu3 %v690_v30 }
  0x6a   : > { %447 = vmatpush.bf16.msra.mxu1 %v689_v31  ;;  %482 = vmatpush.bf16.msra.mxu3 %v689_v31 }
  0xcd   : > { %v387_v32 = vpop.f32.mrf.mxu0 }
  0xce   : > { %v391_v33 = vpack.c.bf16 %v387_v32, %v387_v32 }
  0xd0   : > { %448 = vmatmul.bf16.vlgmr.msra.gmra.mxu1 %v391_v33 }
  0xd3   : > { %v470_v34 = vpop.f32.mrf.mxu2 }
  0xd4   : > { %v474_v35 = vpack.c.bf16 %v470_v34, %v470_v34 }
  0xd5   : > { %v389_v36 = vpop.f32.mrf.mxu0 }
  0xd6   : > { %483 = vmatmul.bf16.vlgmr.msra.gmra.mxu3 %v474_v35 }
  0xdb   : > { %v472_v37 = vpop.f32.mrf.mxu2 }
 0x14d   : > { %v449_v39 = vpop.f32.mrf.mxu1 }
 0x14e   : > { %v454_v40 = vadd.f32 %v453_v38, %v449_v39 }
 0x150   : > { %455 = vst [vmem:[#allocation2] sm:$0xff] %v454_v40 }
 0x155   : > { %v451_v41 = vpop.f32.mrf.mxu1 }
 0x159   : > { %v484_v43 = vpop.f32.mrf.mxu3 }
 0x15a   : > { %v489_v44 = vadd.f32 %v488_v42, %v484_v43 }
 0x15c   : > { %490 = vst [vmem:[#allocation2 + $0x8] sm:$0xff] %v489_v44 }
 0x15d   : > { %494 = sbr.rel (%p683_p4) target bundleno = 357 (0x165), region = 115 }
 0x161   : > { %v486_v45 = vpop.f32.mrf.mxu3 }
 0x162   : > { %v495_v46 = vld [vmem:[#allocation2] sm:$0xff] }
 0x163   : > { %v496_v47 = vld [vmem:[#allocation2 + $0x8] sm:$0xff]  ;;  %497 = vst [vmem:[%s1034_s7] sm:$0xff] %v495_v46 }
 0x164   : > { %498 = vst [vmem:[%s1034_s7 + $0x8] sm:$0xff] %v496_v47 }
 0x165 PF: > { %505 = sbr.rel (!%p989_p12) target bundleno = 365 (0x16d), region = 119  ;;  %s685_s16 = sshll.u32 (%p989_p12), %s860_s19, 3 }
 0x166   : > { %s507_s18 = scalar_lea.vmem (%p989_p12), %s1095_s3, %s685_s16 }
 0x16a   : > { %v538_v48 = vld [vmem:[%s1034_s7] sm:$0xff] }
 0x16b   : > { %v540_v49 = vld [vmem:[%s1034_s7 + $0x8] sm:$0xff]  ;;  %539 = vst [vmem:[%s507_s18] sm:$0xff] %v538_v48 }
 0x16c   : > { %541 = vst [vmem:[%s507_s18 + $0x10] sm:$0xff] %v540_v49 }
 0x16d PF: > { %s13_s22 = sadd.s32 1, %s872_s22   ;;  %s1104_s10 = sld [smem:[#allocation8_spill]] }
 0x16e   : > { %p10_p5 = scmp.ge.s32.totalorder %s13_s22, 6   ;;  %s1105_s26 = sld [smem:[#allocation6_spill]] }
 0x16f   : > { %s1106_s6 = sld [smem:[#allocation7_spill]]  ;;  %s1107_s12 = smov %s836_s13 }
 0x170   : > { %s1108_s13 = smov %s987_s9  ;;  %s1109_s14 = smov %s844_s15 }
 0x171   : > { %s1110_s15 = smov %s984_s8  ;;  %s1111_s16 = smov %s852_s17 }
 0x172   : > { %s1113_s18 = smov %s864_s20  ;;  %s1114_s19 = smov %s868_s21 }
 0x173   : > { %s1112_s17 = smov %s1104_s10  ;;  %12 = sbr.rel (!%p10_p5) target bundleno = 6 (0x6), region = 197 }
 0x174   : > { %s1115_s20 = smov %s1105_s26 }
 0x175   : > { %s1116_s21 = smov %s1106_s6 }

</bundles_post_ra>
